<compile_context>
chip_gen: v7x
topology: tpu7x:2x2x1
jax: 0.10.0
libtpu: 0.0.40
codegen_flags: <defaults>
</compile_context>

<pallas_src>
import functools

import jax
import jax.numpy as jnp
from jax.experimental import pallas as pl
from jax.experimental.pallas import tpu as pltpu


# ---------------------------------------------------------------------------
# Kernel 1: lane-dense conv-as-GEMM + per-tile BN partial statistics
# ---------------------------------------------------------------------------
def _conv_stats_kernel(w_ref, p_ref, y_ref, stats_ref):
    # (Cout, K) @ (K, tm) on the MXU, bf16 operands, f32 accumulation.
    y = jnp.dot(w_ref[...], p_ref[...], preferred_element_type=jnp.float32)
    y_ref[...] = y

    # Per-channel partial sums over the lane axis (XLU slot, overlaps the MXU).
    s = jnp.sum(y, axis=1, keepdims=True)        # (Cout, 1)
    sq = jnp.sum(y * y, axis=1, keepdims=True)   # (Cout, 1)

    cout = y.shape[0]
    col = jax.lax.broadcasted_iota(jnp.int32, (cout, 8), 1)
    packed = jnp.where(col == 0, s, jnp.where(col == 1, sq, 0.0))  # (Cout, 8)
    stats_ref[...] = packed[None]                                  # (1, Cout, 8)


# ---------------------------------------------------------------------------
# Kernel 2: BatchNorm apply (precomputed scale/shift) + LeakyReLU(0.2)
# ---------------------------------------------------------------------------
def _bn_lrelu_kernel(y_ref, scale_ref, shift_ref, o_ref, *, slope):
    z = y_ref[...] * scale_ref[...] + shift_ref[...]   # (Cout, tm) fused FMA
    o_ref[...] = jnp.where(z >= 0, z, slope * z)


# ---------------------------------------------------------------------------
# Helpers
# ---------------------------------------------------------------------------
def _pick_tile(m):
    for t in (2048, 1024, 512, 256, 128):
        if m % t == 0:
            return t
    # TODO(synk): handle ragged M with a pl.cdiv grid + masked remainder tile.
    return m


def _vmem_limit(bytes_needed):
    # double-buffered working set x2 headroom, kept under the v7x 64 MiB ceiling
    return int(min(max(2 * bytes_needed, 8 * 2 ** 20), 48 * 2 ** 20))


# ---------------------------------------------------------------------------
# Wrapper
# ---------------------------------------------------------------------------
@functools.partial(jax.jit, static_argnames=("eps", "slope"))
def deconv_block_forward(x, weight, gamma, beta, *, eps=1e-5, slope=0.2):
    """x: (N, Cin, H, W) f32; weight: (Cout, Cin, 4, 4); gamma/beta: (Cout,)."""
    N, Cin, H, W = x.shape
    Cout = weight.shape[0]
    KH = KW = 4
    stride = 2
    Ho = (H + 2 - KH) // stride + 1
    Wo = (W + 2 - KW) // stride + 1
    M = N * Ho * Wo
    K = Cin * KH * KW

    # ---- glue: im2col directly in transposed (K, M) order, bf16 for the MXU --
    # TODO(synk): for real Cin/H/W move the 16-tap gather in-kernel
    # (memory_space=pl.ANY + manual DMA) to avoid the K-expanded HBM blow-up.
    xp = jnp.pad(x, ((0, 0), (0, 0), (1, 1), (1, 1)))
    cols = [xp[:, :, kh:kh + stride * Ho:stride, kw:kw + stride * Wo:stride]
            for kh in range(KH) for kw in range(KW)]
    patches_t = (jnp.stack(cols, axis=2)            # (N, Cin, 16, Ho, Wo)
                 .transpose(1, 2, 0, 3, 4)          # (Cin, 16, N, Ho, Wo)
                 .reshape(K, M)
                 .astype(jnp.bfloat16))
    wmat = weight.reshape(Cout, K).astype(jnp.bfloat16)

    tm = _pick_tile(M)
    grid_m = M // tm

    # ---- kernel 1: lane-dense GEMM + per-tile BN partial stats ----------------
    # TODO(synk): add a K grid axis (reduction last, f32 VMEM accumulator) once
    # Cin*16 no longer fits a single (Cout,K)/(K,tm) block pair in VMEM.
    k1_bytes = 2 * (Cout * K * 2 + K * tm * 2 + Cout * tm * 4 + Cout * 8 * 4)
    y_t, stats = pl.pallas_call(
        _conv_stats_kernel,
        out_shape=(
            jax.ShapeDtypeStruct((Cout, M), jnp.float32),
            jax.ShapeDtypeStruct((grid_m, Cout, 8), jnp.float32),
        ),
        grid_spec=pltpu.PrefetchScalarGridSpec(
            num_scalar_prefetch=0,
            grid=(grid_m,),
            in_specs=[
                pl.BlockSpec((Cout, K), lambda i: (0, 0)),   # weights, resident
                pl.BlockSpec((K, tm), lambda i: (0, i)),     # patches^T tile
            ],
            out_specs=[
                pl.BlockSpec((Cout, tm), lambda i: (0, i)),      # y^T tile
                pl.BlockSpec((1, Cout, 8), lambda i: (i, 0, 0)),  # partial stats
            ],
        ),
        compiler_params=pltpu.CompilerParams(
            dimension_semantics=("parallel",),
            vmem_limit_bytes=_vmem_limit(k1_bytes)),
    )(wmat, patches_t)

    # ---- tiny host-side fold: batch stats -> per-channel scale/shift ----------
    csum = jnp.sum(stats[:, :, 0], axis=0)           # (Cout,)
    cssq = jnp.sum(stats[:, :, 1], axis=0)           # (Cout,)
    mean = csum / M
    var = cssq / M - mean * mean                     # biased variance (BN train)
    inv = jax.lax.rsqrt(var + eps)
    scale = (gamma * inv).reshape(Cout, 1).astype(jnp.float32)
    shift = (beta - mean * gamma * inv).reshape(Cout, 1).astype(jnp.float32)

    # ---- kernel 2: normalize + LeakyReLU, in place over y^T -------------------
    k2_bytes = 2 * (2 * Cout * tm * 4 + 2 * Cout * 4)
    out_t = pl.pallas_call(
        functools.partial(_bn_lrelu_kernel, slope=float(slope)),
        out_shape=jax.ShapeDtypeStruct((Cout, M), jnp.float32),
        grid_spec=pltpu.PrefetchScalarGridSpec(
            num_scalar_prefetch=0,
            grid=(grid_m,),
            in_specs=[
                pl.BlockSpec((Cout, tm), lambda i: (0, i)),
                pl.BlockSpec((Cout, 1), lambda i: (0, 0)),
                pl.BlockSpec((Cout, 1), lambda i: (0, 0)),
            ],
            out_specs=pl.BlockSpec((Cout, tm), lambda i: (0, i)),
        ),
        input_output_aliases={0: 0},     # write the result in place over y^T
        compiler_params=pltpu.CompilerParams(
            dimension_semantics=("parallel",),
            vmem_limit_bytes=_vmem_limit(k2_bytes)),
    )(y_t, scale, shift)

    # cheap leading-axis transpose back to NCHW
    return out_t.reshape(Cout, N, Ho, Wo).transpose(1, 0, 2, 3)


# ---------------------------------------------------------------------------
# Pure-JAX reference (mirrors the PyTorch module in train mode)
# ---------------------------------------------------------------------------
def _reference(x, weight, gamma, beta, eps=1e-5, slope=0.2, match_bf16=False):
    if match_bf16:  # apples-to-apples with the bf16-fed MXU
        x = x.astype(jnp.bfloat16).astype(jnp.float32)
        weight = weight.astype(jnp.bfloat16).astype(jnp.float32)
    y = jax.lax.conv_general_dilated(
        x, weight, window_strides=(2, 2), padding=((1, 1), (1, 1)),
        dimension_numbers=("NCHW", "OIHW", "NCHW"))
    mean = y.mean(axis=(0, 2, 3), keepdims=True)
    var = ((y - mean) ** 2).mean(axis=(0, 2, 3), keepdims=True)
    yn = (y - mean) * jax.lax.rsqrt(var + eps)
    yn = yn * gamma.reshape(1, -1, 1, 1) + beta.reshape(1, -1, 1, 1)
    return jnp.where(yn >= 0, yn, slope * yn)


if __name__ == "__main__":
    key = jax.random.PRNGKey(0)
    kx, kw = jax.random.split(key)

    N, Cin, H, W = 2, 4, 16, 16
    Cout = 8

    x = jax.random.normal(kx, (N, Cin, H, W), dtype=jnp.float32)
    fan_in = Cin * 4 * 4
    bound = 1.0 / (fan_in ** 0.5)
    weight = jax.random.uniform(kw, (Cout, Cin, 4, 4),
                                minval=-bound, maxval=bound, dtype=jnp.float32)
    gamma = jnp.ones((Cout,), jnp.float32)   # BatchNorm2d default weight
    beta = jnp.zeros((Cout,), jnp.float32)   # BatchNorm2d default bias

    out = jax.block_until_ready(deconv_block_forward(x, weight, gamma, beta))
    assert out.shape == (N, Cout, H // 2, W // 2)

    # exact-logic check against a reference fed the same bf16-rounded operands
    ref_bf16 = _reference(x, weight, gamma, beta, match_bf16=True)
    assert jnp.allclose(out, ref_bf16, atol=1e-3, rtol=1e-3), "mismatch vs bf16-matched reference"

    # accuracy sanity check against the full-f32 module semantics
    ref_f32 = _reference(x, weight, gamma, beta, match_bf16=False)
    assert jnp.allclose(out, ref_f32, atol=2e-2, rtol=2e-2), "bf16 error exceeds budget vs f32 reference"

    print("KERNEL_OK")
</pallas_src>

<mosaic_0001>
module attributes {stable_mosaic.version = 11 : i64} {
  func.func @_conv_stats_kernel(%arg0: i32, %arg1: memref<8x64xbf16, #tpu.memory_space<vmem>>, %arg2: memref<64x128xbf16, #tpu.memory_space<vmem>>, %arg3: memref<8x128xf32, #tpu.memory_space<vmem>>, %arg4: memref<1x8x8xf32, #tpu.memory_space<vmem>>) attributes {dimension_semantics = [#tpu.dimension_semantics<parallel>], iteration_bounds = array<i64: 1>, scalar_prefetch = 0 : i64, scratch_operands = 0 : i64, tpu.core_type = #tpu.core_type<tc>, window_params = [{pipeline_mode = #tpu.pipeline_mode<synchronous>, transform_indices = @transform_0, window_bounds = array<i64: 8, 64>}, {transform_indices = @transform_1, window_bounds = array<i64: 64, 128>}, {transform_indices = @transform_2, window_bounds = array<i64: 8, 128>}, {transform_indices = @transform_3, window_bounds = array<i64: 1, 8, 8>}]} {
    %c0 = arith.constant 0 : index
    %c0_0 = arith.constant 0 : index
    %0 = vector.load %arg1[%c0, %c0_0] : memref<8x64xbf16, #tpu.memory_space<vmem>>, vector<8x64xbf16>
    %c0_1 = arith.constant 0 : index
    %c0_2 = arith.constant 0 : index
    %1 = vector.load %arg2[%c0_1, %c0_2] : memref<64x128xbf16, #tpu.memory_space<vmem>>, vector<64x128xbf16>
    %cst = arith.constant dense<0.000000e+00> : vector<8x128xf32>
    %2 = tpu.matmul %0, %1, %cst {dimension_numbers = #tpu.dot_dimension_numbers<[1], [0], [0], [1], [0, 0, 1, 1], [], []>} : vector<8x64xbf16>, vector<64x128xbf16>, vector<8x128xf32> -> vector<8x128xf32>
    %c0_3 = arith.constant 0 : index
    %c0_4 = arith.constant 0 : index
    %3 = vector.load %arg3[%c0_3, %c0_4] : memref<8x128xf32, #tpu.memory_space<vmem>>, vector<8x128xf32>
    tpu.vector_store %arg3[%c0_3, %c0_4], %2 {strides = array<i32>} : memref<8x128xf32, #tpu.memory_space<vmem>>, vector<8x128xf32>,
    %cst_5 = arith.constant dense<0.000000e+00> : vector<8xf32>
    %4 = vector.multi_reduction <add>, %2, %cst_5 [1] : vector<8x128xf32> to vector<8xf32>
    %5 = vector.shape_cast %4 : vector<8xf32> to vector<8x1xf32>
    %6 = arith.mulf %2, %2 : vector<8x128xf32>
    %cst_6 = arith.constant dense<0.000000e+00> : vector<8xf32>
    %7 = vector.multi_reduction <add>, %6, %cst_6 [1] : vector<8x128xf32> to vector<8xf32>
    %8 = vector.shape_cast %7 : vector<8xf32> to vector<8x1xf32>
    %9 = tpu.iota {dimensions = array<i32: 1>} : vector<8x8xi32>
    %c0_i32 = arith.constant 0 : i32
    %10 = vector.broadcast %c0_i32 : i32 to vector<8x8xi32>
    %11 = arith.cmpi eq, %9, %10 : vector<8x8xi32>
    %c1_i32 = arith.constant 1 : i32
    %12 = vector.broadcast %c1_i32 : i32 to vector<8x8xi32>
    %13 = arith.cmpi eq, %9, %12 : vector<8x8xi32>
    %cst_7 = arith.constant 0.000000e+00 : f32
    %14 = vector.shape_cast %8 : vector<8x1xf32> to vector<8x1xf32>
    %15 = vector.broadcast %14 : vector<8x1xf32> to vector<8x8xf32>
    %16 = vector.broadcast %cst_7 : f32 to vector<8x8xf32>
    %17 = arith.select %13, %15, %16 : vector<8x8xi1>, vector<8x8xf32>
    %18 = vector.shape_cast %5 : vector<8x1xf32> to vector<8x1xf32>
    %19 = vector.broadcast %18 : vector<8x1xf32> to vector<8x8xf32>
    %20 = arith.select %11, %19, %17 : vector<8x8xi1>, vector<8x8xf32>
    %21 = vector.shape_cast %20 : vector<8x8xf32> to vector<1x8x8xf32>
    %c0_8 = arith.constant 0 : index
    %c0_9 = arith.constant 0 : index
    %c0_10 = arith.constant 0 : index
    %22 = vector.load %arg4[%c0_8, %c0_9, %c0_10] : memref<1x8x8xf32, #tpu.memory_space<vmem>>, vector<1x8x8xf32>
    tpu.vector_store %arg4[%c0_8, %c0_9, %c0_10], %21 {strides = array<i32>} : memref<1x8x8xf32, #tpu.memory_space<vmem>>, vector<1x8x8xf32>,
    return
  }
  func.func @transform_0(%arg0: i32) -> (i32, i32) {
    %c0_i32 = arith.constant 0 : i32
    %c0_i32_0 = arith.constant 0 : i32
    %c0_i32_1 = arith.constant 0 : i32
    return %c0_i32, %c0_i32_0 : i32, i32
  }
  func.func @transform_1(%arg0: i32) -> (i32, i32) {
    %c0_i32 = arith.constant 0 : i32
    %c0_i32_0 = arith.constant 0 : i32
    return %c0_i32, %arg0 : i32, i32
  }
  func.func @transform_2(%arg0: i32) -> (i32, i32) {
    %c0_i32 = arith.constant 0 : i32
    %c0_i32_0 = arith.constant 0 : i32
    return %c0_i32, %arg0 : i32, i32
  }
  func.func @transform_3(%arg0: i32) -> (i32, i32, i32) {
    %c0_i32 = arith.constant 0 : i32
    %c0_i32_0 = arith.constant 0 : i32
    %c0_i32_1 = arith.constant 0 : i32
    return %arg0, %c0_i32, %c0_i32_0 : i32, i32, i32
  }
}

module attributes {stable_mosaic.version = 11 : i64} {
  func.func @_bn_lrelu_kernel(%arg0: i32, %arg1: memref<8x128xf32, #tpu.memory_space<vmem>>, %arg2: memref<8x1xf32, #tpu.memory_space<vmem>>, %arg3: memref<8x1xf32, #tpu.memory_space<vmem>>, %arg4: memref<8x128xf32, #tpu.memory_space<vmem>>) attributes {dimension_semantics = [#tpu.dimension_semantics<parallel>], iteration_bounds = array<i64: 1>, scalar_prefetch = 0 : i64, scratch_operands = 0 : i64, tpu.core_type = #tpu.core_type<tc>, window_params = [{transform_indices = @transform_0, window_bounds = array<i64: 8, 128>}, {pipeline_mode = #tpu.pipeline_mode<synchronous>, transform_indices = @transform_1, window_bounds = array<i64: 8, 1>}, {pipeline_mode = #tpu.pipeline_mode<synchronous>, transform_indices = @transform_2, window_bounds = array<i64: 8, 1>}, {transform_indices = @transform_3, window_bounds = array<i64: 8, 128>}]} {
    %c0 = arith.constant 0 : index
    %c0_0 = arith.constant 0 : index
    %0 = vector.load %arg1[%c0, %c0_0] : memref<8x128xf32, #tpu.memory_space<vmem>>, vector<8x128xf32>
    %c0_1 = arith.constant 0 : index
    %c0_2 = arith.constant 0 : index
    %1 = vector.load %arg2[%c0_1, %c0_2] : memref<8x1xf32, #tpu.memory_space<vmem>>, vector<8x1xf32>
    %2 = vector.broadcast %1 : vector<8x1xf32> to vector<8x128xf32>
    %3 = arith.mulf %0, %2 : vector<8x128xf32>
    %c0_3 = arith.constant 0 : index
    %c0_4 = arith.constant 0 : index
    %4 = vector.load %arg3[%c0_3, %c0_4] : memref<8x1xf32, #tpu.memory_space<vmem>>, vector<8x1xf32>
    %5 = vector.broadcast %4 : vector<8x1xf32> to vector<8x128xf32>
    %6 = arith.addf %3, %5 : vector<8x128xf32>
    %cst = arith.constant 0.000000e+00 : f32
    %7 = vector.broadcast %cst : f32 to vector<8x128xf32>
    %8 = arith.cmpf oge, %6, %7 : vector<8x128xf32>
    %cst_5 = arith.constant 2.000000e-01 : f32
    %9 = vector.broadcast %cst_5 : f32 to vector<8x128xf32>
    %10 = arith.mulf %9, %6 : vector<8x128xf32>
    %11 = arith.select %8, %6, %10 : vector<8x128xi1>, vector<8x128xf32>
    %c0_6 = arith.constant 0 : index
    %c0_7 = arith.constant 0 : index
    %12 = vector.load %arg4[%c0_6, %c0_7] : memref<8x128xf32, #tpu.memory_space<vmem>>, vector<8x128xf32>
    tpu.vector_store %arg4[%c0_6, %c0_7], %11 {strides = array<i32>} : memref<8x128xf32, #tpu.memory_space<vmem>>, vector<8x128xf32>,
    return
  }
  func.func @transform_0(%arg0: i32) -> (i32, i32) {
    %c0_i32 = arith.constant 0 : i32
    %c0_i32_0 = arith.constant 0 : i32
    return %c0_i32, %arg0 : i32, i32
  }
  func.func @transform_1(%arg0: i32) -> (i32, i32) {
    %c0_i32 = arith.constant 0 : i32
    %c0_i32_0 = arith.constant 0 : i32
    %c0_i32_1 = arith.constant 0 : i32
    return %c0_i32, %c0_i32_0 : i32, i32
  }
  func.func @transform_2(%arg0: i32) -> (i32, i32) {
    %c0_i32 = arith.constant 0 : i32
    %c0_i32_0 = arith.constant 0 : i32
    %c0_i32_1 = arith.constant 0 : i32
    return %c0_i32, %c0_i32_0 : i32, i32
  }
  func.func @transform_3(%arg0: i32) -> (i32, i32) {
    %c0_i32 = arith.constant 0 : i32
    %c0_i32_0 = arith.constant 0 : i32
    return %c0_i32, %arg0 : i32, i32
  }
}

</mosaic_0001>

<bundles_post_ra>
// kernel: deconv_block_forward.2
= control target key start
LH: loop header
LB: loop body
LE: loop exit
PB: predicated region body
PF: predicated region fallthrough
CT: control target
= control target key end

     0   :  { %v141_v0 = vmov 0.0   ;;  %vm142_vm0 = vmmov 0   ;;  %vm47_vm1 = vcmask 523264   ;;  %v97_v11 = vlaneseq  ;;  %s184_s1 = inlined_call_operand.vmem [shape: bf16[64,128], index: 1, kind: input, shape index: {}]   ;;  %s185_s0 = inlined_call_operand.vmem [shape: bf16[8,64], index: 0, kind: input, shape index: {}]   ;;  %s186_s2 = inlined_call_operand.vmem [shape: f32[8,128], index: 2, kind: output, shape index: {0}]   ;;  %s187_s3 = inlined_call_operand.vmem [shape: f32[1,8,8], index: 3, kind: output, shape index: {1}]  }
   0x1   :  { %123 = vmatprep.subr.bf16.mxu0 %v141_v0  ;;  %v137_v1 = vld [vmem:[%s184_s1] sm:$0xff]   ;;  %131 = vmatprep.mubr.msk.bf16.mxu0 %vm142_vm0, %v141_v0  ;;  %v138_v2 = vld [vmem:[%s184_s1 + $0x8] sm:$0xff]   ;;  %v139_v3 = vld [vmem:[%s184_s1 + $0x10] sm:$0xff]   ;;  %vm103_vm4 = vcmask 64512  }
   0x2   :  { %124 = vmatpush3.bf16.msra.mxu0 %v137_v1  ;;  %v140_v4 = vld [vmem:[%s184_s1 + $0x18] sm:$0xff]   ;;  %v14_v5 = vld [vmem:[%s185_s0] sm:$0xf]  ;;  %v98_v12 = vand.u32 127, %v97_v11 }
   0x3   :  { %125 = vmatprep.subr.bf16.mxu0 %v141_v0 }
   0x4   :  { %vm100_vm2 = vcmp.eq.s32.totalorder %v98_v12, 1  ;;  %vm99_vm3 = vcmp.eq.s32.totalorder %v98_v12, 0 }
   0x6   :  { %126 = vmatpush3.bf16.msra.mxu0 %v138_v2 }
   0x7   :  { %127 = vmatprep.subr.bf16.mxu0 %v141_v0 }
   0xa   :  { %128 = vmatpush3.bf16.msra.mxu0 %v139_v3 }
   0xb   :  { %129 = vmatprep.subr.bf16.mxu0 %v141_v0 }
   0xe   :  { %130 = vmatpush3.bf16.msra.mxu0 %v140_v4 }
  0x11   :  { %132 = vmatmul.mubr.msk.bf16.vlgmr.msra.gmra.mrb[0].mxu0 %vm47_vm1, %v14_v5 }
  0xe4   :  { %v85_v6 = vpop.f32.mrb[0].mxu0 }
  0xe5   :  { %91 = vst [vmem:[%s186_s2] sm:$0xff] %v85_v6  ;;  %v133_v7 = vpop.f32.mrb[1].mxu0  ;;  %v94_v8 = vmul.f32 %v85_v6, %v85_v6 }
  0xe6   :  { %v88_v9 = vpop.f32.mrb[2].mxu0 }
  0xe7   :  { %95 = vadd.xlane.f32.xlu0 %v94_v8  ;;  %v134_v10 = vpop.f32.mrb[3].mxu0 }
  0xeb   :  { %92 = vadd.xlane.f32.xlu0 %v85_v6 }
 0x174   :  { %v96_v13 = vpop.xlane.xlu0 %95 }
 0x175   :  { %v101_v14 = vsel %vm100_vm2, %v96_v13, 0.0 }
 0x178   :  { %v93_v15 = vpop.xlane.xlu0 %92 }
 0x179   :  { %v102_v16 = vsel %vm99_vm3, %v93_v15, %v101_v14 }
 0x17a   :  { %104 = vst.msk [vmem:[%s187_s3] sm:$0xff] %vm103_vm4, %v102_v16 }

// kernel: deconv_block_forward.3
= control target key start
LH: loop header
LB: loop body
LE: loop exit
PB: predicated region body
PF: predicated region fallthrough
CT: control target
= control target key end

     0   :  { %v39_v0 = vmov 0   ;;  %s72_s1 = inlined_call_operand.vmem [shape: f32[8,1], index: 1, kind: input, shape index: {}]   ;;  %s73_s2 = inlined_call_operand.vmem [shape: f32[8,1], index: 2, kind: input, shape index: {}]   ;;  %s74_s0 = inlined_call_operand.vmem [shape: f32[8,128], index: 0, kind: input, shape index: {}, may-alias: {0,3}]   ;;  %s75_s3 = inlined_call_operand.vmem [shape: f32[8,128], index: 3, kind: output, shape index: {}, may-alias: {0,3}]  }
   0x1   :  { %38 = vset.pattern.permute.xlu0 %v39_v0  ;;  %v15_v1 = vld [vmem:[%s72_s1] sm:$0xff] }
   0x2   :  { %18 = vperm.xlu0 %38, %v15_v1   ;;  %v22_v2 = vld [vmem:[%s73_s2] sm:$0xff] }
   0x3   :  { %v14_v4 = vld [vmem:[%s74_s0] sm:$0xff] }
   0x6   :  { %25 = vperm.xlu0 %38, %v22_v2  }
  0x81   :  { %v19_v3 = vpop.permute.xlu0 %18 }
  0x82   :  { %v21_v5 = vmul.f32 %v19_v3, %v14_v4 }
  0x85   :  { %v26_v6 = vpop.permute.xlu0 %25 }
  0x86   :  { %v28_v7 = vadd.f32 %v26_v6, %v21_v5 }
  0x88   :  { %vm29_vm0 = vcmp.ge.f32.partialorder %v28_v7, 0.0  ;;  %v30_v8 = vmul.f32 0.2, %v28_v7 }
  0x8a   :  { %v31_v9 = vsel %vm29_vm0, %v28_v7, %v30_v8 }
  0x8b   :  { %32 = vst [vmem:[%s75_s3] sm:$0xff] %v31_v9 }

</bundles_post_ra>
